<compile_context>
chip_gen: v6e
topology: v6e:2x2x1
jax: 0.10.0
libtpu: 0.0.40
codegen_flags: <defaults>
</compile_context>

<pallas_src>
import jax
import jax.numpy as jnp
from jax.experimental import pallas as pl
from jax.experimental.pallas import tpu as pltpu


def _round_up(x, m):
    return ((x + m - 1) // m) * m


def _svdd_mlp_kernel(x_ref, w1_ref, w2_ref, w3_ref, o_ref):
    # x_ref : [TM, D_in]  (one row-tile of the flattened input, compute dtype)
    # w1_ref: [D_in, H], w2_ref: [H, H], w3_ref: [H, Z]  (fully VMEM-resident)
    w_dtype = w1_ref.dtype
    h1 = jnp.dot(x_ref[...], w1_ref[...], preferred_element_type=jnp.float32)
    h1 = jnp.maximum(h1, 0.0).astype(w_dtype)            # ReLU on f32 accumulator
    h2 = jnp.dot(h1, w2_ref[...], preferred_element_type=jnp.float32)
    h2 = jnp.maximum(h2, 0.0).astype(w_dtype)             # ReLU on f32 accumulator
    z = jnp.dot(h2, w3_ref[...], preferred_element_type=jnp.float32)
    o_ref[...] = z.astype(o_ref.dtype)


def svdd_forward(x_in, w1, w2, w3, *, tm=512, compute_dtype=None, use_pallas=None):
    """x_in: (B, S, D_in).  w1: (H, D_in), w2: (H, H), w3: (Z, H) in PyTorch
    nn.Linear (out, in) layout.  Returns z: (B, S, Z) in x_in.dtype.

    compute_dtype: dtype used for the matmul operands (e.g. jnp.bfloat16);
                   accumulation is always float32.
    use_pallas:    force/skip the Pallas path; default picks Pallas only when
                   M = B*S is large enough to amortize kernel launch cost.
    """
    B, S, D_in = x_in.shape
    H = w1.shape[0]
    Z = w3.shape[0]
    M = B * S
    out_dtype = x_in.dtype
    cdt = compute_dtype if compute_dtype is not None else x_in.dtype

    if use_pallas is None:
        use_pallas = M >= 1024  # below this, XLA-fused matmuls beat pallas launch cost

    # Pre-transpose weights to [in, out] so the hot path is plain row-major matmuls.
    w1t = w1.T.astype(cdt)   # (D_in, H)
    w2t = w2.T.astype(cdt)   # (H, H)
    w3t = w3.T.astype(cdt)   # (H, Z)
    x2d = x_in.reshape(M, D_in).astype(cdt)

    if not use_pallas:
        h = jnp.maximum(jnp.dot(x2d, w1t, preferred_element_type=jnp.float32), 0.0).astype(cdt)
        h = jnp.maximum(jnp.dot(h, w2t, preferred_element_type=jnp.float32), 0.0).astype(cdt)
        z = jnp.dot(h, w3t, preferred_element_type=jnp.float32)
        return z.astype(out_dtype).reshape(B, S, Z)

    # Row tile: as large as requested (>=512 preferred), multiple of 8 sublanes,
    # never larger than the (8-rounded) row count.  VMEM is never the constraint
    # at these feature sizes (tile + weights << scoped VMEM limit).
    tm = max(8, min(int(tm), _round_up(M, 8)))
    tm = _round_up(tm, 8)
    M_pad = _round_up(M, tm)
    if M_pad != M:
        # Zero rows flow through the bias-free MLP as zeros and are sliced off below.
        x2d = jnp.pad(x2d, ((0, M_pad - M), (0, 0)))

    grid = (M_pad // tm,)

    out2d = pl.pallas_call(
        _svdd_mlp_kernel,
        out_shape=jax.ShapeDtypeStruct((M_pad, Z), out_dtype),
        grid_spec=pltpu.PrefetchScalarGridSpec(
            num_scalar_prefetch=0,
            grid=grid,
            in_specs=[
                # x row-tile: pipelined / double-buffered along the grid.
                pl.BlockSpec((tm, D_in), lambda i: (i, 0)),
                # Weights: whole array resident in VMEM, no pipelining bookkeeping.
                pl.BlockSpec(memory_space=pltpu.MemorySpace.VMEM),
                pl.BlockSpec(memory_space=pltpu.MemorySpace.VMEM),
                pl.BlockSpec(memory_space=pltpu.MemorySpace.VMEM),
            ],
            out_specs=pl.BlockSpec((tm, Z), lambda i: (i, 0)),
        ),
        compiler_params=pltpu.CompilerParams(
            dimension_semantics=("parallel",),  # shards row loop across TCs (v7x)
        ),
    )(x2d, w1t, w2t, w3t)

    return out2d[:M].reshape(B, S, Z)


def svdd_forward_ref(x_in, w1, w2, w3, compute_dtype=None):
    """Plain-JAX reference matching nn.Sequential(Linear, ReLU, Linear, ReLU, Linear),
    with the same optional mixed-precision casting as the kernel."""
    cdt = compute_dtype if compute_dtype is not None else x_in.dtype
    h = jnp.maximum(
        jnp.dot(x_in.astype(cdt), w1.T.astype(cdt), preferred_element_type=jnp.float32), 0.0
    ).astype(cdt)
    h = jnp.maximum(
        jnp.dot(h, w2.T.astype(cdt), preferred_element_type=jnp.float32), 0.0
    ).astype(cdt)
    z = jnp.dot(h, w3.T.astype(cdt), preferred_element_type=jnp.float32)
    return z.astype(x_in.dtype)


if __name__ == "__main__":
    # Module hyper-parameters (consistent with the PyTorch __init__):
    #   x_dim has shape (n_unit + 1,) -> n_unit = 4
    #   z_in_dim = 8, hidden_dim = 32, z_dim = 16
    n_unit = 4
    z_in_dim = 8
    hidden_dim = 32
    z_dim = 16
    d_in = z_in_dim * n_unit  # 32

    key = jax.random.PRNGKey(0)
    kx, k1, k2, k3, kx2 = jax.random.split(key, 5)

    # Deterministic weight init mirroring reset_parameters(stdv=0.1):
    w1 = 0.1 * jax.random.normal(k1, (hidden_dim, d_in), dtype=jnp.float32)
    w2 = 0.1 * jax.random.normal(k2, (hidden_dim, hidden_dim), dtype=jnp.float32)
    w3 = 0.1 * jax.random.normal(k3, (z_dim, hidden_dim), dtype=jnp.float32)

    # --- 1) Small demo shape from the module, forced through the Pallas path (f32) ---
    batch, seq = 2, 8
    x_small = jax.random.normal(kx, (batch, seq, d_in), dtype=jnp.float32)
    z_small = svdd_forward(x_small, w1, w2, w3, use_pallas=True)
    jax.block_until_ready(z_small)
    z_small_ref = svdd_forward_ref(x_small, w1, w2, w3)
    assert z_small.shape == (batch, seq, z_dim)
    assert jnp.allclose(z_small, z_small_ref, atol=1e-5, rtol=1e-5)

    # --- 2) Larger ragged shape: bf16 operands, f32 accumulation, tm=512, padded rows ---
    batch2, seq2 = 4, 1000  # M = 4000 -> padded to 4096 -> 8 parallel grid steps
    x_big = jax.random.normal(kx2, (batch2, seq2, d_in), dtype=jnp.float32)
    z_big = svdd_forward(x_big, w1, w2, w3, tm=512,
                         compute_dtype=jnp.bfloat16, use_pallas=True)
    jax.block_until_ready(z_big)
    z_big_ref = svdd_forward_ref(x_big, w1, w2, w3, compute_dtype=jnp.bfloat16)
    assert z_big.shape == (batch2, seq2, z_dim)
    assert jnp.allclose(z_big, z_big_ref, atol=1e-2, rtol=1e-2)

    print("KERNEL_OK")
</pallas_src>

<mosaic_0001>
module attributes {stable_mosaic.version = 11 : i64} {
  func.func @_svdd_mlp_kernel(%arg0: i32, %arg1: memref<16x32xf32, #tpu.memory_space<vmem>>, %arg2: memref<32x32xf32, #tpu.memory_space<vmem>>, %arg3: memref<32x32xf32, #tpu.memory_space<vmem>>, %arg4: memref<32x16xf32, #tpu.memory_space<vmem>>, %arg5: memref<16x16xf32, #tpu.memory_space<vmem>>) attributes {dimension_semantics = [#tpu.dimension_semantics<parallel>], iteration_bounds = array<i64: 1>, scalar_prefetch = 0 : i64, scratch_operands = 0 : i64, tpu.core_type = #tpu.core_type<tc>, window_params = [{transform_indices = @transform_0, window_bounds = array<i64: 16, 32>}, {pipeline_mode = #tpu.pipeline_mode<synchronous>, transform_indices = @transform_1, window_bounds = array<i64: 32, 32>}, {pipeline_mode = #tpu.pipeline_mode<synchronous>, transform_indices = @transform_2, window_bounds = array<i64: 32, 32>}, {pipeline_mode = #tpu.pipeline_mode<synchronous>, transform_indices = @transform_3, window_bounds = array<i64: 32, 16>}, {transform_indices = @transform_4, window_bounds = array<i64: 16, 16>}]} {
    %c0 = arith.constant 0 : index
    %c0_0 = arith.constant 0 : index
    %0 = vector.load %arg1[%c0, %c0_0] : memref<16x32xf32, #tpu.memory_space<vmem>>, vector<16x32xf32>
    %c0_1 = arith.constant 0 : index
    %c0_2 = arith.constant 0 : index
    %1 = vector.load %arg2[%c0_1, %c0_2] : memref<32x32xf32, #tpu.memory_space<vmem>>, vector<32x32xf32>
    %cst = arith.constant dense<0.000000e+00> : vector<16x32xf32>
    %2 = tpu.matmul %0, %1, %cst {dimension_numbers = #tpu.dot_dimension_numbers<[1], [0], [0], [1], [0, 0, 1, 1], [], []>} : vector<16x32xf32>, vector<32x32xf32>, vector<16x32xf32> -> vector<16x32xf32>
    %cst_3 = arith.constant 0.000000e+00 : f32
    %3 = vector.broadcast %cst_3 : f32 to vector<16x32xf32>
    %4 = arith.maximumf %2, %3 : vector<16x32xf32>
    %c0_4 = arith.constant 0 : index
    %c0_5 = arith.constant 0 : index
    %5 = vector.load %arg3[%c0_4, %c0_5] : memref<32x32xf32, #tpu.memory_space<vmem>>, vector<32x32xf32>
    %cst_6 = arith.constant dense<0.000000e+00> : vector<16x32xf32>
    %6 = tpu.matmul %4, %5, %cst_6 {dimension_numbers = #tpu.dot_dimension_numbers<[1], [0], [0], [1], [0, 0, 1, 1], [], []>} : vector<16x32xf32>, vector<32x32xf32>, vector<16x32xf32> -> vector<16x32xf32>
    %cst_7 = arith.constant 0.000000e+00 : f32
    %7 = vector.broadcast %cst_7 : f32 to vector<16x32xf32>
    %8 = arith.maximumf %6, %7 : vector<16x32xf32>
    %c0_8 = arith.constant 0 : index
    %c0_9 = arith.constant 0 : index
    %9 = vector.load %arg4[%c0_8, %c0_9] : memref<32x16xf32, #tpu.memory_space<vmem>>, vector<32x16xf32>
    %cst_10 = arith.constant dense<0.000000e+00> : vector<16x16xf32>
    %10 = tpu.matmul %8, %9, %cst_10 {dimension_numbers = #tpu.dot_dimension_numbers<[1], [0], [0], [1], [0, 0, 1, 1], [], []>} : vector<16x32xf32>, vector<32x16xf32>, vector<16x16xf32> -> vector<16x16xf32>
    %c0_11 = arith.constant 0 : index
    %c0_12 = arith.constant 0 : index
    %11 = vector.load %arg5[%c0_11, %c0_12] : memref<16x16xf32, #tpu.memory_space<vmem>>, vector<16x16xf32>
    tpu.vector_store %arg5[%c0_11, %c0_12], %10 {strides = array<i32>} : memref<16x16xf32, #tpu.memory_space<vmem>>, vector<16x16xf32>,
    return
  }
  func.func @transform_0(%arg0: i32) -> (i32, i32) {
    %c0_i32 = arith.constant 0 : i32
    %c0_i32_0 = arith.constant 0 : i32
    return %arg0, %c0_i32 : i32, i32
  }
  func.func @transform_1(%arg0: i32) -> (i32, i32) {
    %c0_i32 = arith.constant 0 : i32
    %c0_i32_0 = arith.constant 0 : i32
    %c0_i32_1 = arith.constant 0 : i32
    return %c0_i32, %c0_i32_0 : i32, i32
  }
  func.func @transform_2(%arg0: i32) -> (i32, i32) {
    %c0_i32 = arith.constant 0 : i32
    %c0_i32_0 = arith.constant 0 : i32
    %c0_i32_1 = arith.constant 0 : i32
    return %c0_i32, %c0_i32_0 : i32, i32
  }
  func.func @transform_3(%arg0: i32) -> (i32, i32) {
    %c0_i32 = arith.constant 0 : i32
    %c0_i32_0 = arith.constant 0 : i32
    %c0_i32_1 = arith.constant 0 : i32
    return %c0_i32, %c0_i32_0 : i32, i32
  }
  func.func @transform_4(%arg0: i32) -> (i32, i32) {
    %c0_i32 = arith.constant 0 : i32
    %c0_i32_0 = arith.constant 0 : i32
    return %arg0, %c0_i32 : i32, i32
  }
}

</mosaic_0001>

<bundles_post_ra>
// kernel: tpu_custom_call.1
= control target key start
LH: loop header
LB: loop body
LE: loop exit
PB: predicated region body
PF: predicated region fallthrough
CT: control target
= control target key end

     0   :  { %9 = vsyncpa [#allocation3], 0  ;;  %s496_s0 = inlined_call_operand.vmem [shape: f32[16,32], index: 0, kind: input, shape index: {}]   ;;  %s497_s1 = inlined_call_operand.vmem [shape: f32[32,32], index: 1, kind: input, shape index: {}]   ;;  %s498_s2 = inlined_call_operand.hbm [shape: f32[32,32], index: 2, kind: input, shape index: {}]   ;;  %s499_s3 = inlined_call_operand.vmem [shape: f32[32,16], index: 3, kind: input, shape index: {}]   ;;  %s500_s4 = inlined_call_operand.hbm [shape: f32[16,16], index: 4, kind: output, shape index: {}]  }
   0x1   :  { %10 = vsyncpa [#allocation4], 0  ;;  %s419_s15 = smov [#allocation2]  }
   0x2   :  { %s20_s16 = sshll.u32 %s419_s15, 4  ;;  %s21_s16 = int_to_ptr.vmem [resolvable:$true] %s20_s16 }
   0x3   :  { %s383_s17 = scalar_lea.vmem %s21_s16, 512  ;;  %p388_p1 = scmp.lt.s32.totalorder %s21_s16, %s21_s16 }
   0x4   :  { %p384_p0 = scmp.ne.s32.totalorder %s21_s16, %s383_s17  ;;  %p389_p2 = scmp.lt.s32.totalorder %s383_s17, %s383_s17 }
   0x6   :  { %p390_p3 = por %p389_p2, %p388_p1 }
   0x8   :  { %p391_p4 = pnand %p390_p3, %p384_p0 }
   0xa   :  { %394 = shalt.err (!%p391_p4)
}
   0xb   :  { %s420_s18 = smov 128   ;;  %s421_s19 = smov 8  }
   0xc   :  { %26 = dma.hbm_to_vmem [thread:$0]  %s498_s2, 512, %s21_s16, [#allocation3], %s420_s18, %s420_s18, %s421_s19  }
   0xd   :  { %415 = dma.done.wait [#allocation3], 512  }
   0xe   :  { %416 = vsyncadd [#allocation3], 4294966784  ;;  %vm38_vm0 = vcmask 261120   ;;  %v37_v0 = vld [vmem:[%s497_s1 + $0x18] sm:$0xff]  ;;  %v36_v1 = vld [vmem:[%s497_s1 + $0x10] sm:$0xff]  ;;  %vm294_vm1 = vcmask 130048  }
   0xf   :  { %338 = vmatprep.subr.mxu0 %v37_v0  ;;  %v32_v2 = vld [vmem:[%s496_s0] sm:$0xff]  ;;  %v35_v3 = vld [vmem:[%s497_s1 + $0x8] sm:$0xff]  ;;  %v125_v4 = vld [vmem:[#allocation2 + $0x18] sm:$0xff]  ;;  %s422_s13 = smov [#allocation5]  }
  0x10   :  { %339 = vmatpush3.msra.mxu0 %v37_v0  ;;  %346 = vmatprep.mubr.msk.f32.mxu0 %vm38_vm0, %v32_v2  ;;  %v34_v5 = vld [vmem:[%s497_s1] sm:$0xff]  ;;  %v33_v6 = vld [vmem:[%s496_s0 + $0x8] sm:$0xff]  ;;  %v124_v7 = vld [vmem:[#allocation2 + $0x10] sm:$0xff]  ;;  %s302_s14 = sshll.u32 %s422_s13, 4  ;;  %s303_s14 = int_to_ptr.vmem [resolvable:$true] %s302_s14 }
  0x11   :  { %340 = vmatprep.subr.mxu0 %v36_v1  ;;  %349 = vmatprep.subr.mxu1 %v125_v4  ;;  %v123_v8 = vld [vmem:[#allocation2 + $0x8] sm:$0xff]  ;;  %v122_v9 = vld [vmem:[#allocation2] sm:$0xff]  ;;  %v212_v10 = vld [vmem:[%s499_s3 + $0x18] sm:$0xff]  ;;  %s395_s15 = scalar_lea.vmem %s303_s14, 256  ;;  %p400_p6 = scmp.lt.s32.totalorder %s303_s14, %s303_s14 }
  0x12   :  { %341 = vmatpush3.msra.mxu0 %v36_v1  ;;  %350 = vmatpush3.msra.mxu1 %v125_v4  ;;  %v211_v15 = vld [vmem:[%s499_s3 + $0x10] sm:$0xff]  ;;  %v210_v16 = vld [vmem:[%s499_s3 + $0x8] sm:$0xff]  ;;  %v209_v17 = vld [vmem:[%s499_s3] sm:$0xff]  ;;  %p396_p5 = scmp.ne.s32.totalorder %s303_s14, %s395_s15  ;;  %p401_p7 = scmp.lt.s32.totalorder %s395_s15, %s395_s15 }
  0x13   :  { %342 = vmatprep.subr.mxu0 %v35_v3  ;;  %351 = vmatprep.subr.mxu1 %v124_v7 }
  0x14   :  { %343 = vmatpush3.msra.mxu0 %v35_v3  ;;  %352 = vmatpush3.msra.mxu1 %v124_v7  ;;  %p402_p8 = por %p401_p7, %p400_p6 }
  0x15   :  { %344 = vmatprep.subr.mxu0 %v34_v5  ;;  %353 = vmatprep.subr.mxu1 %v123_v8 }
  0x16   :  { %345 = vmatpush3.msra.mxu0 %v34_v5  ;;  %354 = vmatpush3.msra.mxu1 %v123_v8  ;;  %p403_p9 = pnand %p402_p8, %p396_p5 }
  0x17   :  { %347 = vmatmul.mubr.msk.f32.vlgmr.msra.gmra.mxu0 %vm38_vm0, %v33_v6  ;;  %355 = vmatprep.subr.mxu1 %v122_v9 }
  0x18   :  { %356 = vmatpush3.msra.mxu1 %v122_v9  ;;  %360 = vmatprep.subr.mxu0 %v212_v10 }
  0x19   :  { %361 = vmatpush3.msra.mxu0 %v212_v10 }
  0x1a   :  { %362 = vmatprep.subr.mxu0 %v211_v15 }
  0x1b   :  { %363 = vmatpush3.msra.mxu0 %v211_v15 }
  0x1c   :  { %364 = vmatprep.subr.mxu0 %v210_v16 }
  0x1d   :  { %365 = vmatpush3.msra.mxu0 %v210_v16 }
  0x1e   :  { %366 = vmatprep.subr.mxu0 %v209_v17 }
  0x1f   :  { %367 = vmatpush3.msra.mxu0 %v209_v17 }
  0xd7   :  { %v348_v11 = vpop.f32.mrf.mxu0 }
  0xd8   :  { %v121_v14 = vmax.f32 %v348_v11, 0.0 }
  0xd9   :  { %v111_v12 = vpop.f32.mrf.mxu0 }
  0xda   :  { %v120_v13 = vmax.f32 %v111_v12, 0.0 }
  0xdc   :  { %357 = vmatprep.mubr.msk.f32.mxu1 %vm38_vm0, %v120_v13 }
  0xdd   :  { %358 = vmatmul.mubr.msk.f32.vlgmr.msra.gmra.mxu1 %vm38_vm0, %v121_v14 }
 0x19d   :  { %v359_v18 = vpop.f32.mrf.mxu1 }
 0x19e   :  { %v208_v21 = vmax.f32 %v359_v18, 0.0 }
 0x19f   :  { %v198_v19 = vpop.f32.mrf.mxu1 }
 0x1a0   :  { %v207_v20 = vmax.f32 %v198_v19, 0.0 }
 0x1a2   :  { %368 = vmatprep.mubr.msk.f32.mxu0 %vm38_vm0, %v207_v20 }
 0x1a3   :  { %369 = vmatmul.mubr.msk.f32.vlgmr.msra.gmra.mxu0 %vm38_vm0, %v208_v21 }
 0x263   :  { %v370_v22 = vpop.f32.mrf.mxu0 }
 0x264   :  { %296 = vst.msk [vmem:[#allocation5 + $0x8] sm:$0xff] %vm294_vm1, %v370_v22 }
 0x265   :  { %v285_v23 = vpop.f32.mrf.mxu0 }
 0x266   :  { %295 = vst.msk [vmem:[#allocation5] sm:$0xff] %vm294_vm1, %v285_v23 }
 0x267   :  { %406 = shalt.err (!%p403_p9)
}
 0x268   :  { %308 = dma.vmem_to_hbm [thread:$0]  %s303_s14, 256, %s500_s4, [#allocation4], %s420_s18, %s420_s18, %s421_s19  }
 0x269   :  { %417 = dma.done.wait [#allocation4], 256  }
 0x26a   :  { %418 = vsyncadd [#allocation4], 4294967040 }
 0x26b   :  { %312 = vsyncpa [#allocation3], 1 }
 0x26c   :  { %313 = vsyncpa [#allocation4], 1 }

</bundles_post_ra>
